<compile_context>
chip_gen: v7x
topology: tpu7x:2x2x1
jax: 0.10.0
libtpu: 0.0.40
codegen_flags: <defaults>
</compile_context>

<pallas_src>
import jax
import jax.numpy as jnp
from jax import lax
from jax.experimental import pallas as pl
from jax.experimental.pallas import tpu as pltpu


def _choose_row_packing(ho, wo, w_sp):
    """Output rows packed per lane row (g | Ho).

    Smallest divisor g of Ho with g*Wo >= 128 (lane-dense output), subject to
    caps on the pooling-matrix size and on the extra MXU work of the dense
    matmul (2*g*Wo flops per input element)."""
    g = 1
    for d in range(1, ho + 1):
        if ho % d:
            continue
        p_bytes = (2 * d * w_sp) * (d * wo) * 4
        if p_bytes > (2 << 20) or 2 * d * wo > 1024:
            break
        g = d
        if d * wo >= 128:
            break
    return g


def _make_downsample_kernel(sub, nsub):
    """sub: rows per compute sub-tile; nsub: sub-tiles per grid block."""
    batched = (sub % 8 == 0)

    def kernel(x_ref, p_ref, w_ref, o_ref):
        # x_ref: (Cin, tgrp, 2gW)  VMEM  packed input rows
        # p_ref: (2gW,  gWo)       VMEM  folded 2x2 average-pool matrix
        # w_ref: (Cout, Cin)       SMEM  1x1 conv weight
        # o_ref: (Cout, tgrp, gWo) VMEM  packed output rows (NCHW layout)
        cin, _, kdim = x_ref.shape
        cout, _, ndim = o_ref.shape

        # Hoist the pooling-matrix load and all SMEM weight scalars.
        p = p_ref[...]
        wv = [[w_ref[o, c] for c in range(cin)] for o in range(cout)]

        def process(row0):
            rows = pl.ds(row0, sub)
            if batched:
                # One MXU matmul for all input channels of this sub-tile.
                x = x_ref[:, rows, :].astype(jnp.float32)       # (Cin,sub,2gW)
                pooled3 = jnp.dot(
                    x.reshape(cin * sub, kdim), p,
                    preferred_element_type=jnp.float32,
                ).reshape(cin, sub, ndim)
                pooled = [pooled3[c] for c in range(cin)]
            else:
                # Sub-tile smaller than a sublane tile: per-channel matmuls.
                pooled = [
                    jnp.dot(x_ref[c, rows, :].astype(jnp.float32), p,
                            preferred_element_type=jnp.float32)
                    for c in range(cin)
                ]
            # 1x1 conv (no bias) + ReLU on the VPU; lane axis stays dense.
            for o in range(cout):
                acc = pooled[0] * wv[o][0]
                for c in range(1, cin):
                    acc = acc + pooled[c] * wv[o][c]
                o_ref[o, rows, :] = jnp.maximum(acc, 0.0).astype(o_ref.dtype)

        if nsub <= 8:
            for s in range(nsub):            # short: fully static unroll
                process(s * sub)
        else:
            def body(s, carry):              # long: bound live ranges
                process(pl.multiple_of(s * sub, sub))
                return carry
            lax.fori_loop(0, nsub, body, 0)

    return kernel


def downsample(x_nchw, w_oi, *, out_dtype=None, target_block_bytes=None,
               vmem_cap_bytes=None):
    """x_nchw: (N, Cin, H, W); w_oi: (Cout, Cin) 1x1-conv weight (no bias)."""
    n, cin, h, w_sp = x_nchw.shape
    assert h % 2 == 0 and w_sp % 2 == 0, \
        "even spatial dims assumed (bilinear 0.5x == exact 2x2 average pool)"
    ho, wo = h // 2, w_sp // 2
    cout = w_oi.shape[0]
    out_dtype = jnp.dtype(x_nchw.dtype if out_dtype is None else out_dtype)

    # ---- lane-dense row packing (free reshapes, NCHW preserved) -----------
    g = _choose_row_packing(ho, wo, w_sp)
    ho_g = ho // g
    kdim = 2 * g * w_sp                      # packed input lane width
    ndim = g * wo                            # packed output lane width
    x_r = x_nchw.reshape(n, cin, ho_g, kdim)

    # Folded 2x2 average-pool matrix (row pair + column pair + 0.25 scale).
    rin = jnp.arange(kdim) // w_sp
    uin = jnp.arange(kdim) % w_sp
    rout = jnp.arange(ndim) // wo
    vout = jnp.arange(ndim) % wo
    p = 0.25 * (((rin[:, None] // 2) == rout[None, :]) &
                ((uin[:, None] // 2) == vout[None, :])).astype(jnp.float32)

    # ---- generation-aware block sizing -------------------------------------
    if vmem_cap_bytes is None:
        try:
            vmem_cap_bytes = int(pltpu.get_tpu_info().vmem_capacity_bytes)
        except Exception:                    # unknown part: assume v7x (64 MiB)
            vmem_cap_bytes = 64 * 1024 * 1024
    if target_block_bytes is None:
        target_block_bytes = (8 if vmem_cap_bytes <= 64 * 1024 * 1024 else 16) << 20

    in_row = cin * kdim * x_nchw.dtype.itemsize
    out_row = cout * ndim * out_dtype.itemsize
    pooled_row = cin * ndim * 4
    p_bytes = kdim * ndim * 4
    budget = int(vmem_cap_bytes * 0.6) - p_bytes      # double-buffered blocks
    per_row = 2 * (in_row + out_row) + pooled_row
    tgrp = min(ho_g,
               max(1, budget // per_row),
               max(1, target_block_bytes // in_row))
    if tgrp < ho_g:
        tgrp = max(8, (tgrp // 8) * 8) if ho_g >= 8 else ho_g
    # Megacore (v7x): keep at least 2 grid steps so both TensorCores get work.
    if n * pl.cdiv(ho_g, tgrp) < 2 and ho_g >= 16:
        tgrp = ((ho_g + 15) // 16) * 8

    if tgrp % 8 == 0 and tgrp > 8:
        sub, nsub = 8, tgrp // 8
    else:
        sub, nsub = tgrp, 1

    need = 2 * (in_row + out_row) * tgrp + p_bytes + pooled_row * sub + (2 << 20)
    vmem_limit = int(min(max(2 * need, 32 << 20), int(vmem_cap_bytes * 0.9)))
    vmem_limit = max(vmem_limit, need)

    grid = (n, pl.cdiv(ho_g, tgrp))
    out = pl.pallas_call(
        _make_downsample_kernel(sub, nsub),
        out_shape=jax.ShapeDtypeStruct((n, cout, ho_g, ndim), out_dtype),
        grid=grid,
        in_specs=[
            pl.BlockSpec((None, cin, tgrp, kdim), lambda b, i: (b, 0, i, 0)),
            pl.BlockSpec((kdim, ndim), lambda b, i: (0, 0)),
            pl.BlockSpec(memory_space=pltpu.MemorySpace.SMEM),
        ],
        out_specs=pl.BlockSpec((None, cout, tgrp, ndim),
                               lambda b, i: (b, 0, i, 0)),
        compiler_params=pltpu.CompilerParams(
            dimension_semantics=("parallel", "parallel"),
            vmem_limit_bytes=int(vmem_limit)),
    )(x_r, p, w_oi.astype(jnp.float32))
    return out.reshape(n, cout, ho, wo)


def _reference(x_nchw, w_oi):
    n, cin, h, w = x_nchw.shape
    ho, wo = h // 2, w // 2
    pooled = x_nchw.astype(jnp.float32).reshape(n, cin, ho, 2, wo, 2).mean(axis=(3, 5))
    y = jnp.einsum("oc,nchw->nohw", w_oi.astype(jnp.float32), pooled)
    return jnp.maximum(y, 0.0)


if __name__ == "__main__":
    # Module config: in_channels=4, s_factor=4, act=nn.ReLU()
    in_channels, s_factor = 4, 4
    out_channels = in_channels + s_factor
    n, h, w = 2, 16, 16

    key = jax.random.PRNGKey(0)
    kx, kw = jax.random.split(key)
    x = jax.random.normal(kx, (n, in_channels, h, w), dtype=jnp.float32)

    # Deterministic Conv2d-style init: uniform(-1/sqrt(fan_in), 1/sqrt(fan_in)).
    fan_in = in_channels * 1 * 1
    bound = 1.0 / float(fan_in) ** 0.5
    w_conv = jax.random.uniform(kw, (out_channels, in_channels),
                                minval=-bound, maxval=bound, dtype=jnp.float32)

    ref = _reference(x, w_conv)

    # Exact-precision path (matches the PyTorch module: float32 storage).
    out = downsample(x, w_conv)
    jax.block_until_ready(out)
    assert out.shape == (n, out_channels, h // 2, w // 2), out.shape
    err = float(jnp.max(jnp.abs(out - ref)))
    assert jnp.allclose(out, ref, atol=1e-5, rtol=1e-5), err

    # bf16-storage path (halves HBM traffic; compute stays f32 in-kernel).
    out_bf16 = downsample(x.astype(jnp.bfloat16), w_conv,
                          out_dtype=jnp.bfloat16)
    jax.block_until_ready(out_bf16)
    assert out_bf16.dtype == jnp.bfloat16
    assert jnp.allclose(out_bf16.astype(jnp.float32), ref, atol=5e-2, rtol=5e-2)

    print("KERNEL_OK")
</pallas_src>

<mosaic_0001>
module attributes {stable_mosaic.version = 11 : i64} {
  func.func @kernel(%arg0: i32, %arg1: i32, %arg2: memref<1x4x1x256xf32, #tpu.memory_space<vmem>>, %arg3: memref<256x64xf32, #tpu.memory_space<vmem>>, %arg4: memref<8x4xf32, #tpu.memory_space<smem>>, %arg5: memref<1x8x1x64xf32, #tpu.memory_space<vmem>>) attributes {dimension_semantics = [#tpu.dimension_semantics<parallel>, #tpu.dimension_semantics<parallel>], iteration_bounds = array<i64: 2, 1>, scalar_prefetch = 0 : i64, scratch_operands = 0 : i64, tpu.core_type = #tpu.core_type<tc>, window_params = [{transform_indices = @transform_0, window_bounds = array<i64: 1, 4, 1, 256>}, {pipeline_mode = #tpu.pipeline_mode<synchronous>, transform_indices = @transform_1, window_bounds = array<i64: 256, 64>}, {transform_indices = @transform_2, window_bounds = array<i64: 8, 4>}, {transform_indices = @transform_3, window_bounds = array<i64: 1, 8, 1, 64>}]} {
    %c0 = arith.constant 0 : index
    %c0_0 = arith.constant 0 : index
    %0 = vector.load %arg3[%c0, %c0_0] : memref<256x64xf32, #tpu.memory_space<vmem>>, vector<256x64xf32>
    %c0_1 = arith.constant 0 : index
    %c0_2 = arith.constant 0 : index
    %1 = memref.load %arg4[%c0_1, %c0_2] : memref<8x4xf32, #tpu.memory_space<smem>>
    %c0_3 = arith.constant 0 : index
    %c1 = arith.constant 1 : index
    %2 = memref.load %arg4[%c0_3, %c1] : memref<8x4xf32, #tpu.memory_space<smem>>
    %c0_4 = arith.constant 0 : index
    %c2 = arith.constant 2 : index
    %3 = memref.load %arg4[%c0_4, %c2] : memref<8x4xf32, #tpu.memory_space<smem>>
    %c0_5 = arith.constant 0 : index
    %c3 = arith.constant 3 : index
    %4 = memref.load %arg4[%c0_5, %c3] : memref<8x4xf32, #tpu.memory_space<smem>>
    %c1_6 = arith.constant 1 : index
    %c0_7 = arith.constant 0 : index
    %5 = memref.load %arg4[%c1_6, %c0_7] : memref<8x4xf32, #tpu.memory_space<smem>>
    %c1_8 = arith.constant 1 : index
    %c1_9 = arith.constant 1 : index
    %6 = memref.load %arg4[%c1_8, %c1_9] : memref<8x4xf32, #tpu.memory_space<smem>>
    %c1_10 = arith.constant 1 : index
    %c2_11 = arith.constant 2 : index
    %7 = memref.load %arg4[%c1_10, %c2_11] : memref<8x4xf32, #tpu.memory_space<smem>>
    %c1_12 = arith.constant 1 : index
    %c3_13 = arith.constant 3 : index
    %8 = memref.load %arg4[%c1_12, %c3_13] : memref<8x4xf32, #tpu.memory_space<smem>>
    %c2_14 = arith.constant 2 : index
    %c0_15 = arith.constant 0 : index
    %9 = memref.load %arg4[%c2_14, %c0_15] : memref<8x4xf32, #tpu.memory_space<smem>>
    %c2_16 = arith.constant 2 : index
    %c1_17 = arith.constant 1 : index
    %10 = memref.load %arg4[%c2_16, %c1_17] : memref<8x4xf32, #tpu.memory_space<smem>>
    %c2_18 = arith.constant 2 : index
    %c2_19 = arith.constant 2 : index
    %11 = memref.load %arg4[%c2_18, %c2_19] : memref<8x4xf32, #tpu.memory_space<smem>>
    %c2_20 = arith.constant 2 : index
    %c3_21 = arith.constant 3 : index
    %12 = memref.load %arg4[%c2_20, %c3_21] : memref<8x4xf32, #tpu.memory_space<smem>>
    %c3_22 = arith.constant 3 : index
    %c0_23 = arith.constant 0 : index
    %13 = memref.load %arg4[%c3_22, %c0_23] : memref<8x4xf32, #tpu.memory_space<smem>>
    %c3_24 = arith.constant 3 : index
    %c1_25 = arith.constant 1 : index
    %14 = memref.load %arg4[%c3_24, %c1_25] : memref<8x4xf32, #tpu.memory_space<smem>>
    %c3_26 = arith.constant 3 : index
    %c2_27 = arith.constant 2 : index
    %15 = memref.load %arg4[%c3_26, %c2_27] : memref<8x4xf32, #tpu.memory_space<smem>>
    %c3_28 = arith.constant 3 : index
    %c3_29 = arith.constant 3 : index
    %16 = memref.load %arg4[%c3_28, %c3_29] : memref<8x4xf32, #tpu.memory_space<smem>>
    %c4 = arith.constant 4 : index
    %c0_30 = arith.constant 0 : index
    %17 = memref.load %arg4[%c4, %c0_30] : memref<8x4xf32, #tpu.memory_space<smem>>
    %c4_31 = arith.constant 4 : index
    %c1_32 = arith.constant 1 : index
    %18 = memref.load %arg4[%c4_31, %c1_32] : memref<8x4xf32, #tpu.memory_space<smem>>
    %c4_33 = arith.constant 4 : index
    %c2_34 = arith.constant 2 : index
    %19 = memref.load %arg4[%c4_33, %c2_34] : memref<8x4xf32, #tpu.memory_space<smem>>
    %c4_35 = arith.constant 4 : index
    %c3_36 = arith.constant 3 : index
    %20 = memref.load %arg4[%c4_35, %c3_36] : memref<8x4xf32, #tpu.memory_space<smem>>
    %c5 = arith.constant 5 : index
    %c0_37 = arith.constant 0 : index
    %21 = memref.load %arg4[%c5, %c0_37] : memref<8x4xf32, #tpu.memory_space<smem>>
    %c5_38 = arith.constant 5 : index
    %c1_39 = arith.constant 1 : index
    %22 = memref.load %arg4[%c5_38, %c1_39] : memref<8x4xf32, #tpu.memory_space<smem>>
    %c5_40 = arith.constant 5 : index
    %c2_41 = arith.constant 2 : index
    %23 = memref.load %arg4[%c5_40, %c2_41] : memref<8x4xf32, #tpu.memory_space<smem>>
    %c5_42 = arith.constant 5 : index
    %c3_43 = arith.constant 3 : index
    %24 = memref.load %arg4[%c5_42, %c3_43] : memref<8x4xf32, #tpu.memory_space<smem>>
    %c6 = arith.constant 6 : index
    %c0_44 = arith.constant 0 : index
    %25 = memref.load %arg4[%c6, %c0_44] : memref<8x4xf32, #tpu.memory_space<smem>>
    %c6_45 = arith.constant 6 : index
    %c1_46 = arith.constant 1 : index
    %26 = memref.load %arg4[%c6_45, %c1_46] : memref<8x4xf32, #tpu.memory_space<smem>>
    %c6_47 = arith.constant 6 : index
    %c2_48 = arith.constant 2 : index
    %27 = memref.load %arg4[%c6_47, %c2_48] : memref<8x4xf32, #tpu.memory_space<smem>>
    %c6_49 = arith.constant 6 : index
    %c3_50 = arith.constant 3 : index
    %28 = memref.load %arg4[%c6_49, %c3_50] : memref<8x4xf32, #tpu.memory_space<smem>>
    %c7 = arith.constant 7 : index
    %c0_51 = arith.constant 0 : index
    %29 = memref.load %arg4[%c7, %c0_51] : memref<8x4xf32, #tpu.memory_space<smem>>
    %c7_52 = arith.constant 7 : index
    %c1_53 = arith.constant 1 : index
    %30 = memref.load %arg4[%c7_52, %c1_53] : memref<8x4xf32, #tpu.memory_space<smem>>
    %c7_54 = arith.constant 7 : index
    %c2_55 = arith.constant 2 : index
    %31 = memref.load %arg4[%c7_54, %c2_55] : memref<8x4xf32, #tpu.memory_space<smem>>
    %c7_56 = arith.constant 7 : index
    %c3_57 = arith.constant 3 : index
    %32 = memref.load %arg4[%c7_56, %c3_57] : memref<8x4xf32, #tpu.memory_space<smem>>
    %c0_58 = arith.constant 0 : index
    %c0_59 = arith.constant 0 : index
    %c0_60 = arith.constant 0 : index
    %c0_61 = arith.constant 0 : index
    %33 = vector.load %arg2[%c0_58, %c0_59, %c0_60, %c0_61] : memref<1x4x1x256xf32, #tpu.memory_space<vmem>>, vector<1x1x1x256xf32>
    %34 = vector.shape_cast %33 : vector<1x1x1x256xf32> to vector<1x256xf32>
    %cst = arith.constant dense<0.000000e+00> : vector<1x64xf32>
    %35 = tpu.matmul %34, %0, %cst {dimension_numbers = #tpu.dot_dimension_numbers<[1], [0], [0], [1], [0, 0, 1, 1], [], []>} : vector<1x256xf32>, vector<256x64xf32>, vector<1x64xf32> -> vector<1x64xf32>
    %c0_62 = arith.constant 0 : index
    %c1_63 = arith.constant 1 : index
    %c0_64 = arith.constant 0 : index
    %c0_65 = arith.constant 0 : index
    %36 = vector.load %arg2[%c0_62, %c1_63, %c0_64, %c0_65] : memref<1x4x1x256xf32, #tpu.memory_space<vmem>>, vector<1x1x1x256xf32>
    %37 = vector.shape_cast %36 : vector<1x1x1x256xf32> to vector<1x256xf32>
    %cst_66 = arith.constant dense<0.000000e+00> : vector<1x64xf32>
    %38 = tpu.matmul %37, %0, %cst_66 {dimension_numbers = #tpu.dot_dimension_numbers<[1], [0], [0], [1], [0, 0, 1, 1], [], []>} : vector<1x256xf32>, vector<256x64xf32>, vector<1x64xf32> -> vector<1x64xf32>
    %c0_67 = arith.constant 0 : index
    %c2_68 = arith.constant 2 : index
    %c0_69 = arith.constant 0 : index
    %c0_70 = arith.constant 0 : index
    %39 = vector.load %arg2[%c0_67, %c2_68, %c0_69, %c0_70] : memref<1x4x1x256xf32, #tpu.memory_space<vmem>>, vector<1x1x1x256xf32>
    %40 = vector.shape_cast %39 : vector<1x1x1x256xf32> to vector<1x256xf32>
    %cst_71 = arith.constant dense<0.000000e+00> : vector<1x64xf32>
    %41 = tpu.matmul %40, %0, %cst_71 {dimension_numbers = #tpu.dot_dimension_numbers<[1], [0], [0], [1], [0, 0, 1, 1], [], []>} : vector<1x256xf32>, vector<256x64xf32>, vector<1x64xf32> -> vector<1x64xf32>
    %c0_72 = arith.constant 0 : index
    %c3_73 = arith.constant 3 : index
    %c0_74 = arith.constant 0 : index
    %c0_75 = arith.constant 0 : index
    %42 = vector.load %arg2[%c0_72, %c3_73, %c0_74, %c0_75] : memref<1x4x1x256xf32, #tpu.memory_space<vmem>>, vector<1x1x1x256xf32>
    %43 = vector.shape_cast %42 : vector<1x1x1x256xf32> to vector<1x256xf32>
    %cst_76 = arith.constant dense<0.000000e+00> : vector<1x64xf32>
    %44 = tpu.matmul %43, %0, %cst_76 {dimension_numbers = #tpu.dot_dimension_numbers<[1], [0], [0], [1], [0, 0, 1, 1], [], []>} : vector<1x256xf32>, vector<256x64xf32>, vector<1x64xf32> -> vector<1x64xf32>
    %45 = vector.broadcast %1 : f32 to vector<1x64xf32>
    %46 = arith.mulf %35, %45 : vector<1x64xf32>
    %47 = vector.broadcast %2 : f32 to vector<1x64xf32>
    %48 = arith.mulf %38, %47 : vector<1x64xf32>
    %49 = arith.addf %46, %48 : vector<1x64xf32>
    %50 = vector.broadcast %3 : f32 to vector<1x64xf32>
    %51 = arith.mulf %41, %50 : vector<1x64xf32>
    %52 = arith.addf %49, %51 : vector<1x64xf32>
    %53 = vector.broadcast %4 : f32 to vector<1x64xf32>
    %54 = arith.mulf %44, %53 : vector<1x64xf32>
    %55 = arith.addf %52, %54 : vector<1x64xf32>
    %cst_77 = arith.constant 0.000000e+00 : f32
    %56 = vector.broadcast %cst_77 : f32 to vector<1x64xf32>
    %57 = arith.maximumf %55, %56 : vector<1x64xf32>
    %c0_78 = arith.constant 0 : index
    %c0_79 = arith.constant 0 : index
    %c0_80 = arith.constant 0 : index
    %c0_81 = arith.constant 0 : index
    %58 = vector.load %arg5[%c0_78, %c0_79, %c0_80, %c0_81] : memref<1x8x1x64xf32, #tpu.memory_space<vmem>>, vector<1x1x1x64xf32>
    %59 = vector.shape_cast %58 : vector<1x1x1x64xf32> to vector<1x64xf32>
    %60 = vector.shape_cast %57 : vector<1x64xf32> to vector<1x1x1x64xf32>
    tpu.vector_store %arg5[%c0_78, %c0_79, %c0_80, %c0_81], %60 {strides = array<i32>} : memref<1x8x1x64xf32, #tpu.memory_space<vmem>>, vector<1x1x1x64xf32>,
    %61 = vector.broadcast %5 : f32 to vector<1x64xf32>
    %62 = arith.mulf %35, %61 : vector<1x64xf32>
    %63 = vector.broadcast %6 : f32 to vector<1x64xf32>
    %64 = arith.mulf %38, %63 : vector<1x64xf32>
    %65 = arith.addf %62, %64 : vector<1x64xf32>
    %66 = vector.broadcast %7 : f32 to vector<1x64xf32>
    %67 = arith.mulf %41, %66 : vector<1x64xf32>
    %68 = arith.addf %65, %67 : vector<1x64xf32>
    %69 = vector.broadcast %8 : f32 to vector<1x64xf32>
    %70 = arith.mulf %44, %69 : vector<1x64xf32>
    %71 = arith.addf %68, %70 : vector<1x64xf32>
    %cst_82 = arith.constant 0.000000e+00 : f32
    %72 = vector.broadcast %cst_82 : f32 to vector<1x64xf32>
    %73 = arith.maximumf %71, %72 : vector<1x64xf32>
    %c0_83 = arith.constant 0 : index
    %c1_84 = arith.constant 1 : index
    %c0_85 = arith.constant 0 : index
    %c0_86 = arith.constant 0 : index
    %74 = vector.load %arg5[%c0_83, %c1_84, %c0_85, %c0_86] : memref<1x8x1x64xf32, #tpu.memory_space<vmem>>, vector<1x1x1x64xf32>
    %75 = vector.shape_cast %74 : vector<1x1x1x64xf32> to vector<1x64xf32>
    %76 = vector.shape_cast %73 : vector<1x64xf32> to vector<1x1x1x64xf32>
    tpu.vector_store %arg5[%c0_83, %c1_84, %c0_85, %c0_86], %76 {strides = array<i32>} : memref<1x8x1x64xf32, #tpu.memory_space<vmem>>, vector<1x1x1x64xf32>,
    %77 = vector.broadcast %9 : f32 to vector<1x64xf32>
    %78 = arith.mulf %35, %77 : vector<1x64xf32>
    %79 = vector.broadcast %10 : f32 to vector<1x64xf32>
    %80 = arith.mulf %38, %79 : vector<1x64xf32>
    %81 = arith.addf %78, %80 : vector<1x64xf32>
    %82 = vector.broadcast %11 : f32 to vector<1x64xf32>
    %83 = arith.mulf %41, %82 : vector<1x64xf32>
    %84 = arith.addf %81, %83 : vector<1x64xf32>
    %85 = vector.broadcast %12 : f32 to vector<1x64xf32>
    %86 = arith.mulf %44, %85 : vector<1x64xf32>
    %87 = arith.addf %84, %86 : vector<1x64xf32>
    %cst_87 = arith.constant 0.000000e+00 : f32
    %88 = vector.broadcast %cst_87 : f32 to vector<1x64xf32>
    %89 = arith.maximumf %87, %88 : vector<1x64xf32>
    %c0_88 = arith.constant 0 : index
    %c2_89 = arith.constant 2 : index
    %c0_90 = arith.constant 0 : index
    %c0_91 = arith.constant 0 : index
    %90 = vector.load %arg5[%c0_88, %c2_89, %c0_90, %c0_91] : memref<1x8x1x64xf32, #tpu.memory_space<vmem>>, vector<1x1x1x64xf32>
    %91 = vector.shape_cast %90 : vector<1x1x1x64xf32> to vector<1x64xf32>
    %92 = vector.shape_cast %89 : vector<1x64xf32> to vector<1x1x1x64xf32>
    tpu.vector_store %arg5[%c0_88, %c2_89, %c0_90, %c0_91], %92 {strides = array<i32>} : memref<1x8x1x64xf32, #tpu.memory_space<vmem>>, vector<1x1x1x64xf32>,
    %93 = vector.broadcast %13 : f32 to vector<1x64xf32>
    %94 = arith.mulf %35, %93 : vector<1x64xf32>
    %95 = vector.broadcast %14 : f32 to vector<1x64xf32>
    %96 = arith.mulf %38, %95 : vector<1x64xf32>
    %97 = arith.addf %94, %96 : vector<1x64xf32>
    %98 = vector.broadcast %15 : f32 to vector<1x64xf32>
    %99 = arith.mulf %41, %98 : vector<1x64xf32>
    %100 = arith.addf %97, %99 : vector<1x64xf32>
    %101 = vector.broadcast %16 : f32 to vector<1x64xf32>
    %102 = arith.mulf %44, %101 : vector<1x64xf32>
    %103 = arith.addf %100, %102 : vector<1x64xf32>
    %cst_92 = arith.constant 0.000000e+00 : f32
    %104 = vector.broadcast %cst_92 : f32 to vector<1x64xf32>
    %105 = arith.maximumf %103, %104 : vector<1x64xf32>
    %c0_93 = arith.constant 0 : index
    %c3_94 = arith.constant 3 : index
    %c0_95 = arith.constant 0 : index
    %c0_96 = arith.constant 0 : index
    %106 = vector.load %arg5[%c0_93, %c3_94, %c0_95, %c0_96] : memref<1x8x1x64xf32, #tpu.memory_space<vmem>>, vector<1x1x1x64xf32>
    %107 = vector.shape_cast %106 : vector<1x1x1x64xf32> to vector<1x64xf32>
    %108 = vector.shape_cast %105 : vector<1x64xf32> to vector<1x1x1x64xf32>
    tpu.vector_store %arg5[%c0_93, %c3_94, %c0_95, %c0_96], %108 {strides = array<i32>} : memref<1x8x1x64xf32, #tpu.memory_space<vmem>>, vector<1x1x1x64xf32>,
    %109 = vector.broadcast %17 : f32 to vector<1x64xf32>
    %110 = arith.mulf %35, %109 : vector<1x64xf32>
    %111 = vector.broadcast %18 : f32 to vector<1x64xf32>
    %112 = arith.mulf %38, %111 : vector<1x64xf32>
    %113 = arith.addf %110, %112 : vector<1x64xf32>
    %114 = vector.broadcast %19 : f32 to vector<1x64xf32>
    %115 = arith.mulf %41, %114 : vector<1x64xf32>
    %116 = arith.addf %113, %115 : vector<1x64xf32>
    %117 = vector.broadcast %20 : f32 to vector<1x64xf32>
    %118 = arith.mulf %44, %117 : vector<1x64xf32>
    %119 = arith.addf %116, %118 : vector<1x64xf32>
    %cst_97 = arith.constant 0.000000e+00 : f32
    %120 = vector.broadcast %cst_97 : f32 to vector<1x64xf32>
    %121 = arith.maximumf %119, %120 : vector<1x64xf32>
    %c0_98 = arith.constant 0 : index
    %c4_99 = arith.constant 4 : index
    %c0_100 = arith.constant 0 : index
    %c0_101 = arith.constant 0 : index
    %122 = vector.load %arg5[%c0_98, %c4_99, %c0_100, %c0_101] : memref<1x8x1x64xf32, #tpu.memory_space<vmem>>, vector<1x1x1x64xf32>
    %123 = vector.shape_cast %122 : vector<1x1x1x64xf32> to vector<1x64xf32>
    %124 = vector.shape_cast %121 : vector<1x64xf32> to vector<1x1x1x64xf32>
    tpu.vector_store %arg5[%c0_98, %c4_99, %c0_100, %c0_101], %124 {strides = array<i32>} : memref<1x8x1x64xf32, #tpu.memory_space<vmem>>, vector<1x1x1x64xf32>,
    %125 = vector.broadcast %21 : f32 to vector<1x64xf32>
    %126 = arith.mulf %35, %125 : vector<1x64xf32>
    %127 = vector.broadcast %22 : f32 to vector<1x64xf32>
    %128 = arith.mulf %38, %127 : vector<1x64xf32>
    %129 = arith.addf %126, %128 : vector<1x64xf32>
    %130 = vector.broadcast %23 : f32 to vector<1x64xf32>
    %131 = arith.mulf %41, %130 : vector<1x64xf32>
    %132 = arith.addf %129, %131 : vector<1x64xf32>
    %133 = vector.broadcast %24 : f32 to vector<1x64xf32>
    %134 = arith.mulf %44, %133 : vector<1x64xf32>
    %135 = arith.addf %132, %134 : vector<1x64xf32>
    %cst_102 = arith.constant 0.000000e+00 : f32
    %136 = vector.broadcast %cst_102 : f32 to vector<1x64xf32>
    %137 = arith.maximumf %135, %136 : vector<1x64xf32>
    %c0_103 = arith.constant 0 : index
    %c5_104 = arith.constant 5 : index
    %c0_105 = arith.constant 0 : index
    %c0_106 = arith.constant 0 : index
    %138 = vector.load %arg5[%c0_103, %c5_104, %c0_105, %c0_106] : memref<1x8x1x64xf32, #tpu.memory_space<vmem>>, vector<1x1x1x64xf32>
    %139 = vector.shape_cast %138 : vector<1x1x1x64xf32> to vector<1x64xf32>
    %140 = vector.shape_cast %137 : vector<1x64xf32> to vector<1x1x1x64xf32>
    tpu.vector_store %arg5[%c0_103, %c5_104, %c0_105, %c0_106], %140 {strides = array<i32>} : memref<1x8x1x64xf32, #tpu.memory_space<vmem>>, vector<1x1x1x64xf32>,
    %141 = vector.broadcast %25 : f32 to vector<1x64xf32>
    %142 = arith.mulf %35, %141 : vector<1x64xf32>
    %143 = vector.broadcast %26 : f32 to vector<1x64xf32>
    %144 = arith.mulf %38, %143 : vector<1x64xf32>
    %145 = arith.addf %142, %144 : vector<1x64xf32>
    %146 = vector.broadcast %27 : f32 to vector<1x64xf32>
    %147 = arith.mulf %41, %146 : vector<1x64xf32>
    %148 = arith.addf %145, %147 : vector<1x64xf32>
    %149 = vector.broadcast %28 : f32 to vector<1x64xf32>
    %150 = arith.mulf %44, %149 : vector<1x64xf32>
    %151 = arith.addf %148, %150 : vector<1x64xf32>
    %cst_107 = arith.constant 0.000000e+00 : f32
    %152 = vector.broadcast %cst_107 : f32 to vector<1x64xf32>
    %153 = arith.maximumf %151, %152 : vector<1x64xf32>
    %c0_108 = arith.constant 0 : index
    %c6_109 = arith.constant 6 : index
    %c0_110 = arith.constant 0 : index
    %c0_111 = arith.constant 0 : index
    %154 = vector.load %arg5[%c0_108, %c6_109, %c0_110, %c0_111] : memref<1x8x1x64xf32, #tpu.memory_space<vmem>>, vector<1x1x1x64xf32>
    %155 = vector.shape_cast %154 : vector<1x1x1x64xf32> to vector<1x64xf32>
    %156 = vector.shape_cast %153 : vector<1x64xf32> to vector<1x1x1x64xf32>
    tpu.vector_store %arg5[%c0_108, %c6_109, %c0_110, %c0_111], %156 {strides = array<i32>} : memref<1x8x1x64xf32, #tpu.memory_space<vmem>>, vector<1x1x1x64xf32>,
    %157 = vector.broadcast %29 : f32 to vector<1x64xf32>
    %158 = arith.mulf %35, %157 : vector<1x64xf32>
    %159 = vector.broadcast %30 : f32 to vector<1x64xf32>
    %160 = arith.mulf %38, %159 : vector<1x64xf32>
    %161 = arith.addf %158, %160 : vector<1x64xf32>
    %162 = vector.broadcast %31 : f32 to vector<1x64xf32>
    %163 = arith.mulf %41, %162 : vector<1x64xf32>
    %164 = arith.addf %161, %163 : vector<1x64xf32>
    %165 = vector.broadcast %32 : f32 to vector<1x64xf32>
    %166 = arith.mulf %44, %165 : vector<1x64xf32>
    %167 = arith.addf %164, %166 : vector<1x64xf32>
    %cst_112 = arith.constant 0.000000e+00 : f32
    %168 = vector.broadcast %cst_112 : f32 to vector<1x64xf32>
    %169 = arith.maximumf %167, %168 : vector<1x64xf32>
    %c0_113 = arith.constant 0 : index
    %c7_114 = arith.constant 7 : index
    %c0_115 = arith.constant 0 : index
    %c0_116 = arith.constant 0 : index
    %170 = vector.load %arg5[%c0_113, %c7_114, %c0_115, %c0_116] : memref<1x8x1x64xf32, #tpu.memory_space<vmem>>, vector<1x1x1x64xf32>
    %171 = vector.shape_cast %170 : vector<1x1x1x64xf32> to vector<1x64xf32>
    %172 = vector.shape_cast %169 : vector<1x64xf32> to vector<1x1x1x64xf32>
    tpu.vector_store %arg5[%c0_113, %c7_114, %c0_115, %c0_116], %172 {strides = array<i32>} : memref<1x8x1x64xf32, #tpu.memory_space<vmem>>, vector<1x1x1x64xf32>,
    return
  }
  func.func @transform_0(%arg0: i32, %arg1: i32) -> (i32, i32, i32, i32) {
    %c0_i32 = arith.constant 0 : i32
    %c0_i32_0 = arith.constant 0 : i32
    %c0_i32_1 = arith.constant 0 : i32
    return %arg0, %c0_i32, %arg1, %c0_i32_0 : i32, i32, i32, i32
  }
  func.func @transform_1(%arg0: i32, %arg1: i32) -> (i32, i32) {
    %c0_i32 = arith.constant 0 : i32
    %c0_i32_0 = arith.constant 0 : i32
    %c0_i32_1 = arith.constant 0 : i32
    return %c0_i32, %c0_i32_0 : i32, i32
  }
  func.func @transform_2(%arg0: i32, %arg1: i32) -> (i32, i32) {
    %c0_i32 = arith.constant 0 : i32
    %c0_i32_0 = arith.constant 0 : i32
    %c0_i32_1 = arith.constant 0 : i32
    return %c0_i32, %c0_i32_0 : i32, i32
  }
  func.func @transform_3(%arg0: i32, %arg1: i32) -> (i32, i32, i32, i32) {
    %c0_i32 = arith.constant 0 : i32
    %c0_i32_0 = arith.constant 0 : i32
    %c0_i32_1 = arith.constant 0 : i32
    return %arg0, %c0_i32, %arg1, %c0_i32_0 : i32, i32, i32, i32
  }
}

</mosaic_0001>

<bundles_post_ra>
// kernel: tpu_custom_call.1
= control target key start
LH: loop header
LB: loop body
LE: loop exit
PB: predicated region body
PF: predicated region fallthrough
CT: control target
= control target key end

     0   :  { %8 = vsyncpa [#allocation4], 0  ;;  %s1748_s0 = inlined_call_operand.vmem [shape: f32[2,4,1,256], index: 0, kind: input, shape index: {}]   ;;  %s1749_s1 = inlined_call_operand.vmem [shape: f32[256,64], index: 1, kind: input, shape index: {}]   ;;  %s1750_s2 = inlined_call_operand.vmem [shape: f32[8,4], index: 2, kind: input, shape index: {}]   ;;  %s1751_s3 = inlined_call_operand.hbm [shape: f32[2,8,1,64], index: 3, kind: output, shape index: {}]  }
   0x1   :  { %9 = vsyncpa [#allocation3], 0 }
   0x2   :  { %11 = vsyncpa [#allocation3 + $0x1], 0  ;;  %s1335_s12 = smov 0   ;;  %s1337_s13 = smov 0  }
   0x3   :  { %s1339_s14 = smov 0   ;;  %s1341_s15 = smov 0  }
   0x4   :  { %s1343_s16 = smov 0   ;;  %s1345_s17 = smov 0  }
   0x5 LB: > { %s820_s18 = sadd.s32 4294967295, %s1309_s17   ;;  %s821_s19 = sadd.s32 4294967294, %s1309_s17   ;;  %s1309_s17 = sphi %s1345_s17, %s17_s17   ;;  %s1305_s16 = sphi %s1343_s16, %s1760_s16   ;;  %s1301_s15 = sphi %s1341_s15, %s1759_s15   ;;  %s1297_s14 = sphi %s1339_s14, %s1758_s14   ;;  %s1293_s13 = sphi %s1337_s13, %s1757_s13   ;;  %s1289_s12 = sphi %s1335_s12, %s1756_s12  }
   0x6   : > { %s29_s20 = sadd.s32 1, %s1305_s16  ;;  %s108_s21 = sadd.s32 1, %s1297_s14 }
   0x7   : > { %p31_p0 = scmp.ge.s32.totalorder %s29_s20, 2  ;;  %p118_p1 = scmp.ne.s32.totalorder %s1297_s14, %s1293_s13 }
   0x8   : > { %p119_p2 = scmp.eq.s32.totalorder %s820_s18, 1  ;;  %p124_p3 = scmp.ne.s32.totalorder %s1293_s13, %s1289_s12 }
   0x9   : > { %s1762_s20 = smov (%p31_p0, %s29_s20), 0  ;;  %p125_p5 = scmp.eq.s32.totalorder %s821_s19, 1 }
   0xa   : > { %p1375_p4 = por %p119_p2, %p118_p1  ;;  %s103_s23 = ssub.s32 %s1305_s16, %s1762_s20 }
   0xb   : > { %p822_p6 = scmp.ge.s32.totalorder %s1309_s17, 1  ;;  %p106_p7 = scmp.eq.s32.totalorder %s103_s23, 0 }
   0xc   : > { %p1382_p8 = por %p125_p5, %p124_p3  ;;  %p132_p9 = scmp.lt.s32.totalorder %s1309_s17, 3 }
   0xd   : > { %s1388_s25 = scalar_select %p106_p7, %s1297_s14, %s108_s21  }
   0xe   : > { %p1390_p10 = pnand %p822_p6, %p132_p9  ;;  %p1394_p11 = scmp.eq.s32.totalorder %s820_s18, 0 }
   0xf   : > { %s148_s30 = sshll.u32 %s1750_s2, 4  ;;  %s149_s30 = int_to_ptr.vmem [resolvable:$true] %s148_s30 }
  0x10   : > { %p1150_p12 = pneg %p1390_p10  ;;  %s1212_s4 = scalar_lea.vmem %s149_s30, 128 }
  0x11   : > { %p1213_p0 = scmp.ne.s32.totalorder %s149_s30, %s1212_s4  ;;  %p1220_p5 = scmp.lt.s32.totalorder %s149_s30, %s149_s30 }
  0x12   : > { %p1151_p13 = pnand %p1394_p11, %p1150_p12  ;;  %p1221_p6 = scmp.lt.s32.totalorder %s1212_s4, %s1212_s4 }
  0x14   : > { %p1214_p1 = pneg %p1151_p13  ;;  %p1222_p7 = por %p1221_p6, %p1220_p5 }
  0x16   : > { %p1215_p2 = pnand %p1214_p1, %p1213_p0 }
  0x18   : > { %p1216_p3 = pneg %p1215_p2 }
  0x1a   : > { %p1223_p9 = pnand %p1222_p7, %p1216_p3 }
  0x1c   : > { %1226 = shalt.err (!%p1223_p9)
}
  0x1d   : > { %s1311_s5 = smov [#allocation2]   ;;  %172 = sbr.rel (%p1390_p10) target bundleno = 349 (0x15d), region = 32 }
  0x1e   : > { %1153 = dma.vmem_to_smem (!%p1151_p13), %s149_s30, 128, %s1311_s5, [#allocation4]  }
  0x24   : > { %1280 = dma.done.wait (%p1394_p11), [#allocation4], 128  }
  0x25   : > { %1282 = vsyncadd (%p1394_p11), [#allocation4], 4294967168 }
  0x26   : > { %178 = sfence }
  0x27   : > { %v224_v0 = vld [vmem:[%s1749_s1 + $0x80] sm:$0xff]  ;;  %v225_v1 = vld [vmem:[%s1749_s1 + $0x88] sm:$0xff]  ;;  %p200_p10 = scmp.lt.s32.totalorder %s1301_s15, 1  ;;  %v274_v3 = vlaneseq  ;;  %v226_v6 = vld [vmem:[%s1749_s1 + $0x90] sm:$0xff]  ;;  %s1584_s9 = sld [smem:[#allocation2 + $0x80]]  ;;  %vm615_vm0 = vcmask 516096  }
  0x28   : > { %v208_v2 = vld [vmem:[%s1749_s1] sm:$0xff]  ;;  %v1421_v4 = vpack.c.bf16 %v225_v1, %v224_v0  ;;  %v209_v5 = vld [vmem:[%s1749_s1 + $0x8] sm:$0xff]  ;;  %v227_v7 = vld [vmem:[%s1749_s1 + $0x98] sm:$0xff]  ;;  %s1588_s11 = sld [smem:[#allocation2 + $0x180]]  ;;  %s1598_s26 = sld [smem:[#allocation2 + $0x1]] }
  0x29   : > { %v1432_v8 = vpack.c.bf16 %v209_v5, %v208_v2  ;;  %v1434_v9 = vpack.c.bf16 %v227_v7, %v226_v6  ;;  %v210_v10 = vld [vmem:[%s1749_s1 + $0x10] sm:$0xff]  ;;  %v211_v11 = vld [vmem:[%s1749_s1 + $0x18] sm:$0xff]  ;;  %v228_v12 = vld [vmem:[%s1749_s1 + $0xa0] sm:$0xff]  ;;  %s201_s7 = scalar_select %p200_p10, %s1301_s15, 1  ;;  %v1451_v14 = vshrl.u32 %v274_v3, 7 }
  0x2a   : > { %1017 = vmatprep.subr.bf16.mxu0 %v1421_v4  ;;  %1049 = vmatprep.subr.bf16.mxu1 %v1421_v4  ;;  %v229_v13 = vld [vmem:[%s1749_s1 + $0xa8] sm:$0xff]  ;;  %v1455_v15 = vpack.c.bf16 %v211_v11, %v210_v10  ;;  %v212_v17 = vld [vmem:[%s1749_s1 + $0x20] sm:$0xff]  ;;  %v230_v19 = vld [vmem:[%s1749_s1 + $0xb0] sm:$0xff]  ;;  %s1590_s18 = sld [smem:[#allocation2 + $0x200]]  ;;  %s1600_s27 = sld [smem:[#allocation2 + $0x81]] }
  0x2b   : > { %1019 = vmatpush3.bf16.msra.mxu0 %v1432_v8  ;;  %1051 = vmatpush3.bf16.msra.mxu1 %v1432_v8  ;;  %s828_s10 = sshll.u32 %s201_s7, 3  ;;  %v1459_v16 = vpack.c.bf16 %v229_v13, %v228_v12  ;;  %v213_v18 = vld [vmem:[%s1749_s1 + $0x28] sm:$0xff]  ;;  %v231_v20 = vld [vmem:[%s1749_s1 + $0xb8] sm:$0xff]  ;;  %v1479_v21 = vsub.s32 1, %v1451_v14  ;;  %v214_v24 = vld [vmem:[%s1749_s1 + $0x30] sm:$0xff]  ;;  %v276_v54 = vsub.s32 0, %v1451_v14 }
  0x2c   : > { %1021 = vmatprep.subr.bf16.mxu0 %v1434_v9  ;;  %1053 = vmatprep.subr.bf16.mxu1 %v1434_v9  ;;  %s1476_s4 = scalar_lea.vmem %s1748_s0, %s828_s10  ;;  %v1483_v22 = vpack.c.bf16 %v213_v18, %v212_v17  ;;  %v1487_v23 = vpack.c.bf16 %v231_v20, %v230_v19  ;;  %v215_v25 = vld [vmem:[%s1749_s1 + $0x38] sm:$0xff]  ;;  %v232_v26 = vld [vmem:[%s1749_s1 + $0xc0] sm:$0xff]  ;;  %v233_v27 = vld [vmem:[%s1749_s1 + $0xc8] sm:$0xff]  ;;  %s1586_s10 = sld [smem:[#allocation2 + $0x100]] }
  0x2d   : > { %v272_v28 = vld [vmem:[%s1476_s4] sm:$0x3]  ;;  %v860_v30 = vld [vmem:[%s1476_s4 + $0x2] sm:$0x3]  ;;  %v1506_v31 = vpack.c.bf16 %v215_v25, %v214_v24  ;;  %v1511_v33 = vpack.c.bf16 %v233_v27, %v232_v26  ;;  %v217_v35 = vld [vmem:[%s1749_s1 + $0x48] sm:$0xff]  ;;  %s1592_s19 = sld [smem:[#allocation2 + $0x280]]  ;;  %v617_v1 = vstv %s1584_s9 }
  0x2e   : > { %v281_v29 = vrot.slane %v272_v28, %v1479_v21  ;;  %v364_v32 = vrot.slane %v860_v30, %v1479_v21  ;;  %v216_v34 = vld [vmem:[%s1749_s1 + $0x40] sm:$0xff]  ;;  %v234_v36 = vld [vmem:[%s1749_s1 + $0xd0] sm:$0xff]  ;;  %v235_v37 = vld [vmem:[%s1749_s1 + $0xd8] sm:$0xff]  ;;  %v277_v56 = vrot.slane %v272_v28, %v276_v54  ;;  %v360_v57 = vrot.slane %v860_v30, %v276_v54  ;;  %s1594_s21 = sld [smem:[#allocation2 + $0x300]]  ;;  %s1602_s28 = sld [smem:[#allocation2 + $0x101]] }
  0x2f   : > { %1023 = vmatpush3.bf16.msra.mxu0 %v1455_v15  ;;  %1055 = vmatpush3.bf16.msra.mxu1 %v1455_v15  ;;  %v1034_v38 = vpack.c.bf16 %v217_v35, %v216_v34  ;;  %v1036_v39 = vpack.c.bf16 %v235_v37, %v234_v36  ;;  %v218_v40 = vld [vmem:[%s1749_s1 + $0x50] sm:$0xff]  ;;  %v219_v41 = vld [vmem:[%s1749_s1 + $0x58] sm:$0xff]  ;;  %v236_v42 = vld [vmem:[%s1749_s1 + $0xe0] sm:$0xff]  ;;  %s1596_s23 = sld [smem:[#allocation2 + $0x380]]  ;;  %s1604_s29 = sld [smem:[#allocation2 + $0x181]]  ;;  %v645_v5 = vstv %s1588_s11 }
  0x30   : > { %1025 = vmatprep.subr.bf16.mxu0 %v1459_v16  ;;  %1057 = vmatprep.subr.bf16.mxu1 %v1459_v16  ;;  %v237_v43 = vld [vmem:[%s1749_s1 + $0xe8] sm:$0xff]  ;;  %v1038_v44 = vpack.c.bf16 %v219_v41, %v218_v40  ;;  %v220_v46 = vld [vmem:[%s1749_s1 + $0x60] sm:$0xff]  ;;  %v238_v48 = vld [vmem:[%s1749_s1 + $0xf0] sm:$0xff]  ;;  %s1606_s30 = sld [smem:[#allocation2 + $0x201]]  ;;  %v659_v6 = vstv %s1590_s18  ;;  %s1630_s8 = sld [smem:[#allocation2 + $0x2]] }
  0x31   : > { %348 = vmatprep.mubr.f32.mxu0 %v281_v29  ;;  %431 = vmatprep.mubr.f32.mxu1 %v364_v32  ;;  %v1040_v45 = vpack.c.bf16 %v237_v43, %v236_v42  ;;  %v221_v47 = vld [vmem:[%s1749_s1 + $0x68] sm:$0xff]  ;;  %v239_v49 = vld [vmem:[%s1749_s1 + $0xf8] sm:$0xff]  ;;  %v222_v52 = vld [vmem:[%s1749_s1 + $0x70] sm:$0xff]  ;;  %s1608_s5 = sld [smem:[#allocation2 + $0x281]]  ;;  %v605_v12 = vstv %s1598_s26  ;;  %s1634_s9 = sld [smem:[#allocation2 + $0x102]] }
  0x32   : > { %v1042_v50 = vpack.c.bf16 %v221_v47, %v220_v46  ;;  %v1044_v51 = vpack.c.bf16 %v239_v49, %v238_v48  ;;  %v223_v53 = vld [vmem:[%s1749_s1 + $0x78] sm:$0xff]  ;;  %v861_v58 = vld [vmem:[%s1476_s4 + $0x4] sm:$0x3]  ;;  %v862_v59 = vld [vmem:[%s1476_s4 + $0x6] sm:$0x3]  ;;  %s1582_s4 = sld [smem:[#allocation2]]  ;;  %v619_v13 = vstv %s1600_s27 }
  0x33   : > { %1027 = vmatpush3.bf16.msra.mxu0 %v1483_v22  ;;  %1059 = vmatpush3.bf16.msra.mxu1 %v1483_v22  ;;  %v1046_v55 = vpack.c.bf16 %v223_v53, %v222_v52  ;;  %v447_v60 = vrot.slane %v861_v58, %v1479_v21  ;;  %v530_v61 = vrot.slane %v862_v59, %v1479_v21  ;;  %s1610_s6 = sld [smem:[#allocation2 + $0x301]]  ;;  %v673_v7 = vstv %s1592_s19  ;;  %s1638_s11 = sld [smem:[#allocation2 + $0x202]] }
  0x34   : > { %1029 = vmatprep.subr.bf16.mxu0 %v1487_v23  ;;  %1061 = vmatprep.subr.bf16.mxu1 %v1487_v23  ;;  %v443_v62 = vrot.slane %v861_v58, %v276_v54  ;;  %v526_v63 = vrot.slane %v862_v59, %v276_v54  ;;  %s1612_s7 = sld [smem:[#allocation2 + $0x381]]  ;;  %s1640_s18 = sld [smem:[#allocation2 + $0x282]] }
  0x35   : > { %v701_v10 = vstv %s1596_s23  ;;  %v647_v17 = vstv %s1604_s29  ;;  %s1642_s19 = sld [smem:[#allocation2 + $0x302]]  ;;  %s1646_s23 = sld [smem:[#allocation2 + $0x3]] }
  0x36   : > { %v661_v18 = vstv %s1606_s30  ;;  %s1648_s26 = sld [smem:[#allocation2 + $0x83]]  ;;  %v608_v46 = vstv %s1630_s8 }
  0x37   : > { %1031 = vmatpush3.bf16.msra.mxu0 %v1506_v31  ;;  %1063 = vmatpush3.bf16.msra.mxu1 %v1506_v31  ;;  %v675_v19 = vstv %s1608_s5  ;;  %s1650_s27 = sld [smem:[#allocation2 + $0x103]]  ;;  %v636_v49 = vstv %s1634_s9 }
  0x38   : > { %1033 = vmatprep.subr.bf16.mxu0 %v1511_v33  ;;  %1065 = vmatprep.subr.bf16.mxu1 %v1511_v33  ;;  %v603_v0 = vstv %s1582_s4  ;;  %s1632_s4 = sld [smem:[#allocation2 + $0x82]]  ;;  %s1654_s29 = sld [smem:[#allocation2 + $0x203]] }
  0x39   : > { %v689_v20 = vstv %s1610_s6  ;;  %s1656_s30 = sld [smem:[#allocation2 + $0x283]] }
  0x3a   : > { %v703_v21 = vstv %s1612_s7  ;;  %s1658_s5 = sld [smem:[#allocation2 + $0x303]]  ;;  %v678_v52 = vstv %s1640_s18  ;;  %s197_s7 = sand.u32 1, %s1293_s13  }
  0x3b   : > { %1035 = vmatpush3.bf16.msra.mxu0 %v1034_v38  ;;  %1067 = vmatpush3.bf16.msra.mxu1 %v1034_v38  ;;  %s1660_s6 = sld [smem:[#allocation2 + $0x383]]  ;;  %v611_v58 = vstv %s1646_s23  ;;  %s1677_s8 = sshll.u32 %s197_s7, 3 }
  0x3c   : > { %1037 = vmatprep.subr.bf16.mxu0 %v1036_v39  ;;  %1069 = vmatprep.subr.bf16.mxu1 %v1036_v39  ;;  %v625_v59 = vstv %s1648_s26  ;;  %s199_s9 = scalar_lea.vmem [#allocation5], %s1677_s8  ;;  %s1312_s23 = smov [#allocation5]  }
  0x3d   : > { %s1231_s26 = sshll.u32 %s1312_s23, 4  ;;  %s1232_s26 = int_to_ptr.vmem [resolvable:$false] %s1231_s26 }
  0x3e   : > { %v622_v47 = vstv %s1632_s4  ;;  %s875_s4 = sshll.u32 %s1301_s15, 7  ;;  %s1702_s15 = scalar_lea.sflag [#allocation3], %s197_s7 }
  0x3f   : > { %1039 = vmatpush3.bf16.msra.mxu0 %v1038_v44  ;;  %1071 = vmatpush3.bf16.msra.mxu1 %v1038_v44 }
  0x40   : > { %1041 = vmatprep.subr.bf16.mxu0 %v1040_v45  ;;  %1073 = vmatprep.subr.bf16.mxu1 %v1040_v45 }
  0x43   : > { %1043 = vmatpush3.bf16.msra.mxu0 %v1042_v50  ;;  %1075 = vmatpush3.bf16.msra.mxu1 %v1042_v50 }
  0x44   : > { %1045 = vmatprep.subr.bf16.mxu0 %v1044_v51  ;;  %1077 = vmatprep.subr.bf16.mxu1 %v1044_v51 }
  0x47   : > { %1047 = vmatpush3.bf16.msra.mxu0 %v1046_v55  ;;  %1079 = vmatpush3.bf16.msra.mxu1 %v1046_v55 }
  0x48   : > { %1081 = vmatprep.subr.bf16.mxu0 %v1421_v4  ;;  %1113 = vmatprep.subr.bf16.mxu1 %v1421_v4  ;;  %v631_v4 = vstv %s1586_s10  ;;  %s1636_s10 = sld [smem:[#allocation2 + $0x182]] }
  0x4a   : > { %349 = vmatmul.mubr.f32.vlgmr.msra.gmra.mrb[0].mxu0 %v277_v56  ;;  %432 = vmatmul.mubr.f32.vlgmr.msra.gmra.mrb[0].mxu1 %v360_v57 }
  0x4b   : > { %1083 = vmatpush3.bf16.msra.mxu0 %v1432_v8  ;;  %1115 = vmatpush3.bf16.msra.mxu1 %v1432_v8 }
  0x4c   : > { %1085 = vmatprep.subr.bf16.mxu0 %v1434_v9  ;;  %1117 = vmatprep.subr.bf16.mxu1 %v1434_v9  ;;  %v687_v9 = vstv %s1594_s21  ;;  %s1644_s21 = sld [smem:[#allocation2 + $0x382]] }
  0x4d   : > { %514 = vmatprep.mubr.f32.mxu0 %v447_v60  ;;  %597 = vmatprep.mubr.f32.mxu1 %v530_v61 }
  0x4f   : > { %1087 = vmatpush3.bf16.msra.mxu0 %v1455_v15  ;;  %1119 = vmatpush3.bf16.msra.mxu1 %v1455_v15 }
  0x50   : > { %1089 = vmatprep.subr.bf16.mxu0 %v1459_v16  ;;  %1121 = vmatprep.subr.bf16.mxu1 %v1459_v16  ;;  %v633_v16 = vstv %s1602_s28  ;;  %s1652_s28 = sld [smem:[#allocation2 + $0x183]] }
  0x52   : > { %v706_v56 = vstv %s1644_s21 }
  0x53   : > { %1091 = vmatpush3.bf16.msra.mxu0 %v1483_v22  ;;  %1123 = vmatpush3.bf16.msra.mxu1 %v1483_v22 }
  0x54   : > { %1093 = vmatprep.subr.bf16.mxu0 %v1487_v23  ;;  %1125 = vmatprep.subr.bf16.mxu1 %v1487_v23 }
  0x57   : > { %1095 = vmatpush3.bf16.msra.mxu0 %v1506_v31  ;;  %1127 = vmatpush3.bf16.msra.mxu1 %v1506_v31 }
  0x58   : > { %1097 = vmatprep.subr.bf16.mxu0 %v1511_v33  ;;  %1129 = vmatprep.subr.bf16.mxu1 %v1511_v33 }
  0x5b   : > { %1099 = vmatpush3.bf16.msra.mxu0 %v1034_v38  ;;  %1131 = vmatpush3.bf16.msra.mxu1 %v1034_v38 }
  0x5c   : > { %1101 = vmatprep.subr.bf16.mxu0 %v1036_v39  ;;  %1133 = vmatprep.subr.bf16.mxu1 %v1036_v39 }
  0x5f   : > { %1103 = vmatpush3.bf16.msra.mxu0 %v1038_v44  ;;  %1135 = vmatpush3.bf16.msra.mxu1 %v1038_v44 }
  0x60   : > { %1105 = vmatprep.subr.bf16.mxu0 %v1040_v45  ;;  %1137 = vmatprep.subr.bf16.mxu1 %v1040_v45 }
  0x63   : > { %1107 = vmatpush3.bf16.msra.mxu0 %v1042_v50  ;;  %1139 = vmatpush3.bf16.msra.mxu1 %v1042_v50  ;;  %v650_v50 = vstv %s1636_s10  ;;  %s730_s10 = sshll.u32 %s199_s9, 4  ;;  %s1690_s10 = int_to_ptr.vmem [resolvable:$true] %s730_s10 }
  0x64   : > { %1109 = vmatprep.subr.bf16.mxu0 %v1044_v51  ;;  %1141 = vmatprep.subr.bf16.mxu1 %v1044_v51  ;;  %v664_v51 = vstv %s1638_s11  ;;  %s1227_s21 = scalar_lea.vmem %s1690_s10, 128  ;;  %p1234_p0 = scmp.lt.s32.totalorder %s1690_s10, %s1232_s26 }
  0x65   : > { %p1228_p11 = scmp.ne.s32.totalorder %s1690_s10, %s1227_s21 }
  0x67   : > { %1111 = vmatpush3.bf16.msra.mxu0 %v1046_v55  ;;  %1143 = vmatpush3.bf16.msra.mxu1 %v1046_v55  ;;  %v692_v55 = vstv %s1642_s19  ;;  %s1688_s19 = scalar_lea.hbm %s1751_s3, %s875_s4  ;;  %p1229_p12 = pnand %p1228_p11, %p1375_p4 }
  0x69   : > { %p1230_p13 = pneg %p1229_p12 }
  0x6a   : > { %515 = vmatmul.mubr.f32.vlgmr.msra.gmra.mrb[2].mxu0 %v443_v62  ;;  %598 = vmatmul.mubr.f32.vlgmr.msra.gmra.mrb[2].mxu1 %v526_v63  ;;  %v639_v62 = vstv %s1650_s27  ;;  %v653_v63 = vstv %s1652_s28  ;;  %s1233_s27 = scalar_lea.vmem %s1232_s26, 256 }
  0x6b   : > { %p1235_p1 = scmp.lt.s32.totalorder %s1233_s27, %s1227_s21 }
  0x6d   : > { %p1236_p2 = por %p1235_p1, %p1234_p0 }
  0x6f   : > { %p1237_p3 = pnand %p1236_p2, %p1230_p13 }
 0x11d   : > { %v908_v2 = vpop.f32.mrb[0].mxu0  ;;  %v943_v3 = vpop.f32.mrb[0].mxu1 }
 0x11e   : > { %v909_v8 = vpop.f32.mrb[1].mxu0  ;;  %v944_v11 = vpop.f32.mrb[1].mxu1 }
 0x11f   : > { %v910_v14 = vadd.f32 %v909_v8, %v908_v2  ;;  %v945_v15 = vadd.f32 %v944_v11, %v943_v3  ;;  %v695_v2 = vstv %s1658_s5  ;;  %v709_v3 = vstv %s1660_s6 }
 0x121   : > { %v604_v22 = vmul.f32 %v910_v14, %v603_v0  ;;  %v618_v23 = vmul.f32 %v910_v14, %v617_v1  ;;  %v632_v24 = vmul.f32 %v910_v14, %v631_v4  ;;  %v646_v25 = vmul.f32 %v910_v14, %v645_v5 }
 0x122   : > { %v660_v26 = vmul.f32 %v910_v14, %v659_v6  ;;  %v674_v27 = vmul.f32 %v910_v14, %v673_v7  ;;  %v688_v28 = vmul.f32 %v910_v14, %v687_v9  ;;  %v702_v29 = vmul.f32 %v910_v14, %v701_v10 }
 0x123   : > { %v606_v30 = vmul.f32 %v945_v15, %v605_v12  ;;  %v620_v31 = vmul.f32 %v945_v15, %v619_v13  ;;  %v634_v32 = vmul.f32 %v945_v15, %v633_v16  ;;  %v648_v33 = vmul.f32 %v945_v15, %v647_v17 }
 0x124   : > { %v662_v34 = vmul.f32 %v945_v15, %v661_v18  ;;  %v676_v35 = vmul.f32 %v945_v15, %v675_v19  ;;  %v690_v36 = vmul.f32 %v945_v15, %v689_v20  ;;  %v704_v37 = vmul.f32 %v945_v15, %v703_v21 }
 0x125   : > { %v607_v38 = vadd.f32 %v606_v30, %v604_v22  ;;  %v621_v39 = vadd.f32 %v620_v31, %v618_v23  ;;  %v635_v40 = vadd.f32 %v634_v32, %v632_v24  ;;  %v649_v41 = vadd.f32 %v648_v33, %v646_v25 }
 0x126   : > { %v663_v42 = vadd.f32 %v662_v34, %v660_v26  ;;  %v677_v43 = vadd.f32 %v676_v35, %v674_v27  ;;  %v691_v44 = vadd.f32 %v690_v36, %v688_v28  ;;  %v705_v45 = vadd.f32 %v704_v37, %v702_v29 }
 0x127   : > { %v667_v0 = vstv %s1654_s29  ;;  %v681_v1 = vstv %s1656_s30 }
 0x13d   : > { %v978_v48 = vpop.f32.mrb[2].mxu0  ;;  %v1013_v53 = vpop.f32.mrb[2].mxu1 }
 0x13e   : > { %v979_v54 = vpop.f32.mrb[3].mxu0  ;;  %v1014_v57 = vpop.f32.mrb[3].mxu1 }
 0x13f   : > { %v980_v60 = vadd.f32 %v979_v54, %v978_v48  ;;  %v1015_v61 = vadd.f32 %v1014_v57, %v1013_v53 }
 0x141   : > { %v609_v4 = vmul.f32 %v980_v60, %v608_v46  ;;  %v623_v5 = vmul.f32 %v980_v60, %v622_v47  ;;  %v637_v6 = vmul.f32 %v980_v60, %v636_v49  ;;  %v651_v7 = vmul.f32 %v980_v60, %v650_v50 }
 0x142   : > { %v665_v8 = vmul.f32 %v980_v60, %v664_v51  ;;  %v679_v9 = vmul.f32 %v980_v60, %v678_v52  ;;  %v693_v10 = vmul.f32 %v980_v60, %v692_v55  ;;  %v707_v11 = vmul.f32 %v980_v60, %v706_v56 }
 0x143   : > { %v610_v12 = vadd.f32 %v609_v4, %v607_v38  ;;  %v624_v13 = vadd.f32 %v623_v5, %v621_v39  ;;  %v638_v14 = vadd.f32 %v637_v6, %v635_v40  ;;  %v652_v15 = vadd.f32 %v651_v7, %v649_v41 }
 0x144   : > { %v666_v16 = vadd.f32 %v665_v8, %v663_v42  ;;  %v680_v17 = vadd.f32 %v679_v9, %v677_v43  ;;  %v694_v18 = vadd.f32 %v693_v10, %v691_v44  ;;  %v708_v19 = vadd.f32 %v707_v11, %v705_v45 }
 0x145   : > { %v612_v20 = vmul.f32 %v1015_v61, %v611_v58  ;;  %v626_v21 = vmul.f32 %v1015_v61, %v625_v59  ;;  %v640_v22 = vmul.f32 %v1015_v61, %v639_v62  ;;  %v654_v23 = vmul.f32 %v1015_v61, %v653_v63 }
 0x146   : > { %v668_v24 = vmul.f32 %v1015_v61, %v667_v0  ;;  %v682_v25 = vmul.f32 %v1015_v61, %v681_v1  ;;  %v696_v26 = vmul.f32 %v1015_v61, %v695_v2  ;;  %v710_v27 = vmul.f32 %v1015_v61, %v709_v3 }
 0x147   : > { %v613_v28 = vadd.f32 %v612_v20, %v610_v12  ;;  %v627_v29 = vadd.f32 %v626_v21, %v624_v13  ;;  %v641_v30 = vadd.f32 %v640_v22, %v638_v14  ;;  %v655_v31 = vadd.f32 %v654_v23, %v652_v15 }
 0x148   : > { %v669_v32 = vadd.f32 %v668_v24, %v666_v16  ;;  %v683_v33 = vadd.f32 %v682_v25, %v680_v17  ;;  %v697_v34 = vadd.f32 %v696_v26, %v694_v18  ;;  %v711_v35 = vadd.f32 %v710_v27, %v708_v19 }
 0x149   : > { %v614_v36 = vmax.f32 %v613_v28, 0.0  ;;  %v628_v37 = vmax.f32 %v627_v29, 0.0  ;;  %v642_v38 = vmax.f32 %v641_v30, 0.0  ;;  %v656_v39 = vmax.f32 %v655_v31, 0.0 }
 0x14a   : > { %v670_v40 = vmax.f32 %v669_v32, 0.0  ;;  %v684_v41 = vmax.f32 %v683_v33, 0.0  ;;  %v698_v42 = vmax.f32 %v697_v34, 0.0  ;;  %v712_v43 = vmax.f32 %v711_v35, 0.0 }
 0x14b   : > { %616 = vst.msk [vmem:[%s199_s9] sm:$0x1] %vm615_vm0, %v614_v36  ;;  %863 = vst.msk [vmem:[%s199_s9 + $0x1] sm:$0x1] %vm615_vm0, %v628_v37 }
 0x14c   : > { %864 = vst.msk [vmem:[%s199_s9 + $0x2] sm:$0x1] %vm615_vm0, %v642_v38  ;;  %865 = vst.msk [vmem:[%s199_s9 + $0x3] sm:$0x1] %vm615_vm0, %v656_v39 }
 0x14d   : > { %866 = vst.msk [vmem:[%s199_s9 + $0x4] sm:$0x1] %vm615_vm0, %v670_v40  ;;  %867 = vst.msk [vmem:[%s199_s9 + $0x5] sm:$0x1] %vm615_vm0, %v684_v41 }
 0x14e   : > { %868 = vst.msk [vmem:[%s199_s9 + $0x6] sm:$0x1] %vm615_vm0, %v698_v42  ;;  %869 = vst.msk [vmem:[%s199_s9 + $0x7] sm:$0x1] %vm615_vm0, %v712_v43 }
 0x14f   : > { %1240 = shalt.err (!%p1237_p3)
}
 0x150   : > { %s1241_s28 = scalar_lea.hbm %s1688_s19, 128  ;;  %s1245_s5 = scalar_lea.hbm %s1751_s3, 256 }
 0x151   : > { %p1242_p5 = scmp.ne.s32.totalorder %s1688_s19, %s1241_s28  ;;  %p1246_p9 = scmp.lt.u32.totalorder %s1688_s19, %s1751_s3 }
 0x152   : > { %p1247_p10 = scmp.lt.u32.totalorder %s1245_s5, %s1241_s28  ;;  %p1249_p12 = scmp.lt.u32.totalorder %s1241_s28, %s1688_s19 }
 0x153   : > { %p1243_p6 = pnand %p1242_p5, %p1375_p4 }
 0x154   : > { %p1248_p11 = por %p1247_p10, %p1246_p9 }
 0x155   : > { %p1244_p7 = pneg %p1243_p6 }
 0x156   : > { %p1250_p13 = por %p1249_p12, %p1248_p11 }
 0x158   : > { %p1251_p0 = pnand %p1250_p13, %p1244_p7 }
 0x15a   : > { %1254 = shalt.err (!%p1251_p0)
}
 0x15b   : > { %s1313_s8 = smov 16   ;;  %s1314_s4 = smov 1  }
 0x15c   : > { %1148 = dma.vmem_to_hbm [thread:$0]  (%p1375_p4), %s1690_s10, 128, %s1688_s19, %s1702_s15, %s1313_s8, %s1313_s8, %s1314_s4  }
 0x15d PF: > { %p1160_p1 = scmp.ge.s32.totalorder %s1309_s17, 2  ;;  %s745_s9 = sand.u32 1, %s1289_s12  }
 0x15e   : > { %s746_s11 = scalar_lea.sflag [#allocation3], %s745_s9 }
 0x15f   : > { %p1155_p2 = pnand %p1160_p1, %p1382_p8 }
 0x161   : > { %1284 = dma.done.wait (!%p1155_p2), %s746_s11, 128  }
 0x162   : > { %1286 = vsyncadd (!%p1155_p2), %s746_s11, 4294967168  ;;  %s17_s17 = sadd.s32 1, %s1309_s17   ;;  %s1756_s12 = smov %s1293_s13 }
 0x163   : > { %p14_p3 = scmp.ge.s32.totalorder %s17_s17, 4   ;;  %s1757_s13 = smov %s1297_s14 }
 0x164   : > { %s1758_s14 = smov %s1388_s25  ;;  %s1759_s15 = smov %s1305_s16 }
 0x165   : > { %s1760_s16 = smov %s1762_s20  ;;  %16 = sbr.rel (!%p14_p3) target bundleno = 5 (0x5), region = 82 }
 0x16c   :  { %751 = vsyncpa [#allocation3], 1 }
 0x16d   :  { %753 = vsyncpa [#allocation3 + $0x1], 1 }
 0x16e   :  { %754 = vsyncpa [#allocation4], 1 }
 0x16f   :  { %756 = vsyncpa [#allocation4 + $0x1], 1 }

</bundles_post_ra>
